<compile_context>
chip_gen: v7x
topology: tpu7x:2x2x1
jax: 0.10.0
libtpu: 0.0.40
codegen_flags: <defaults>
</compile_context>

<pallas_src>
import jax
import jax.numpy as jnp
from jax import lax
from jax.experimental import pallas as pl
from jax.experimental.pallas import tpu as pltpu

EPS = 1e-5

_SINGLE_PASS_VMEM_BUDGET = 40 << 20   # conservative for v7x 64 MiB per-TC VMEM
_DEFAULT_MAX_TILE_BYTES = 32 << 20


# --------------------------------------------------------------------------
# Kernels
# --------------------------------------------------------------------------

def _gn1_fused_kernel(x_ref, g_ref, b_ref, o_ref):
    """Single pass: fused sum / sum-of-squares stats + folded scale/shift FMA."""
    xf = x_ref[...].astype(jnp.float32)          # (1, R, L)
    n = xf.size                                  # static python int
    s1 = jnp.sum(xf)
    s2 = jnp.sum(xf * xf)
    mean = s1 / n
    var = jnp.maximum(s2 / n - mean * mean, 0.0)  # biased var, guarded vs cancellation
    inv = lax.rsqrt(var + EPS)
    scale = g_ref[...] * inv                      # (1, R, 1) f32
    shift = b_ref[...] - mean * scale             # (1, R, 1) f32
    if o_ref.dtype == jnp.bfloat16:
        # Keep the elementwise FMA in bf16 (bf16 VPU on v6e/v7x); stats stay f32.
        o_ref[...] = x_ref[...] * scale.astype(jnp.bfloat16) + shift.astype(jnp.bfloat16)
    else:
        o_ref[...] = (xf * scale + shift).astype(o_ref.dtype)


def _gn1_stats_kernel(x_ref, s1_ref, s2_ref):
    """Tiled pass 1: accumulate per-sample sum and sum-of-squares."""
    @pl.when(pl.program_id(1) == 0)
    def _():
        s1_ref[...] = jnp.zeros_like(s1_ref)
        s2_ref[...] = jnp.zeros_like(s2_ref)

    xf = x_ref[...].astype(jnp.float32)
    s1_ref[...] = s1_ref[...] + jnp.sum(xf)
    s2_ref[...] = s2_ref[...] + jnp.sum(xf * xf)


def _gn1_affine_kernel(x_ref, sc_ref, sh_ref, o_ref):
    """Tiled pass 2: y = x * scale + shift with precomputed per-row scale/shift."""
    sc = sc_ref[...]                              # (1, R, 1) f32
    sh = sh_ref[...]                              # (1, R, 1) f32
    if o_ref.dtype == jnp.bfloat16:
        o_ref[...] = x_ref[...] * sc.astype(jnp.bfloat16) + sh.astype(jnp.bfloat16)
    else:
        o_ref[...] = (x_ref[...].astype(jnp.float32) * sc + sh).astype(o_ref.dtype)


# --------------------------------------------------------------------------
# Layout / tiling helpers
# --------------------------------------------------------------------------

def _choose_layout(C, HW):
    """Pick (R, L) with R*L == C*HW, L | HW, L % 128 == 0 (prefer R % 8 == 0)."""
    T = C * HW
    candidates = [d for d in range(128, HW + 1, 128) if HW % d == 0]
    if not candidates:
        # TODO(synk): HW has no multiple-of-128 divisor (e.g. H=W=7); fall back
        #             to the (C, HW) layout (full-array block, masked stores).
        return C, HW
    L = max(candidates, key=lambda d: (T // d % 8 == 0, d))
    return T // L, L


def _choose_lane_tile(R, L, itemsize, max_tile_bytes):
    """Largest multiple-of-128 divisor of L whose working set fits the tile budget."""
    if L % 128 != 0:
        # TODO(synk): row-tiling fallback for non-128-multiple HW with huge slabs.
        return L
    candidates = [d for d in range(128, L + 1, 128) if L % d == 0]
    fitting = [d for d in candidates
               if (4 * R * d * itemsize + 2 * R * d * 4) <= max_tile_bytes]
    return max(fitting) if fitting else min(candidates)


def _vmem_limit(nbytes):
    return int(min(max(nbytes, 32 << 20), 64 << 20))


# --------------------------------------------------------------------------
# Wrapper
# --------------------------------------------------------------------------

def groupnorm1_pallas(x_nchw, gamma, beta, *, force_tiled=False,
                      max_tile_bytes=_DEFAULT_MAX_TILE_BYTES):
    """GroupNorm(num_groups=1, num_channels=C) over an NCHW tensor."""
    N, C, H, W = x_nchw.shape
    HW = H * W
    itemsize = jnp.dtype(x_nchw.dtype).itemsize

    R, L = _choose_layout(C, HW)
    rows_per_ch = HW // L if L <= HW else 1       # L | HW by construction
    x3 = x_nchw.reshape(N, R, L)

    # gamma/beta stay f32 (no round-trip through the input dtype), expanded per row.
    g_rows = jnp.repeat(gamma.astype(jnp.float32), rows_per_ch).reshape(1, R, 1)
    b_rows = jnp.repeat(beta.astype(jnp.float32), rows_per_ch).reshape(1, R, 1)

    slab_bytes = R * L * itemsize
    single_need = 4 * slab_bytes + 2 * R * L * 4 + (2 << 20)  # 2x dbl-buf in/out + f32 temps
    use_tiled = force_tiled or single_need > _SINGLE_PASS_VMEM_BUDGET

    if not use_tiled:
        out3 = pl.pallas_call(
            _gn1_fused_kernel,
            out_shape=jax.ShapeDtypeStruct((N, R, L), x_nchw.dtype),
            grid_spec=pltpu.PrefetchScalarGridSpec(
                num_scalar_prefetch=0,
                grid=(N,),
                in_specs=[
                    pl.BlockSpec((1, R, L), lambda i: (i, 0, 0)),
                    pl.BlockSpec((1, R, 1), lambda i: (0, 0, 0)),
                    pl.BlockSpec((1, R, 1), lambda i: (0, 0, 0)),
                ],
                out_specs=pl.BlockSpec((1, R, L), lambda i: (i, 0, 0)),
            ),
            compiler_params=pltpu.CompilerParams(
                dimension_semantics=("parallel",),
                vmem_limit_bytes=_vmem_limit(single_need),
            ),
        )(x3, g_rows, b_rows)
        return out3.reshape(N, C, H, W)

    # ---- two-pass tiled path (large slabs / forced) ----
    TL = _choose_lane_tile(R, L, itemsize, max_tile_bytes)
    num_t = L // TL
    tile_bytes = R * TL * itemsize
    tiled_need = 4 * tile_bytes + 2 * R * TL * 4 + (2 << 20)

    # Pass 1: per-sample sum and sum-of-squares (reduction over lane tiles).
    s1, s2 = pl.pallas_call(
        _gn1_stats_kernel,
        out_shape=(jax.ShapeDtypeStruct((N, 1, 1), jnp.float32),
                   jax.ShapeDtypeStruct((N, 1, 1), jnp.float32)),
        grid_spec=pltpu.PrefetchScalarGridSpec(
            num_scalar_prefetch=0,
            grid=(N, num_t),
            in_specs=[pl.BlockSpec((1, R, TL), lambda i, j: (i, 0, j))],
            out_specs=(pl.BlockSpec((1, 1, 1), lambda i, j: (i, 0, 0)),
                       pl.BlockSpec((1, 1, 1), lambda i, j: (i, 0, 0))),
        ),
        compiler_params=pltpu.CompilerParams(
            dimension_semantics=("parallel", "arbitrary"),
            vmem_limit_bytes=_vmem_limit(tiled_need),
        ),
    )(x3)

    # Tiny scale/shift math in plain JAX (negligible vs the slab traffic).
    n_elem = jnp.float32(C * HW)
    mean = s1 / n_elem                                          # (N, 1, 1)
    var = jnp.maximum(s2 / n_elem - mean * mean, 0.0)
    inv = lax.rsqrt(var + EPS)
    scale = inv * g_rows                                        # (N, R, 1) f32
    shift = b_rows - mean * scale                               # (N, R, 1) f32

    # Pass 2: pure FMA, both grid axes parallel (uses both TCs on v7x even for N=1).
    out3 = pl.pallas_call(
        _gn1_affine_kernel,
        out_shape=jax.ShapeDtypeStruct((N, R, L), x_nchw.dtype),
        grid_spec=pltpu.PrefetchScalarGridSpec(
            num_scalar_prefetch=0,
            grid=(N, num_t),
            in_specs=[
                pl.BlockSpec((1, R, TL), lambda i, j: (i, 0, j)),
                pl.BlockSpec((1, R, 1), lambda i, j: (i, 0, 0)),
                pl.BlockSpec((1, R, 1), lambda i, j: (i, 0, 0)),
            ],
            out_specs=pl.BlockSpec((1, R, TL), lambda i, j: (i, 0, j)),
        ),
        compiler_params=pltpu.CompilerParams(
            dimension_semantics=("parallel", "parallel"),
            vmem_limit_bytes=_vmem_limit(tiled_need),
        ),
    )(x3, scale, shift)
    return out3.reshape(N, C, H, W)


class PreNormPallas:
    """JAX/Pallas equivalent of PreNorm(dim, fn): x -> fn(GroupNorm(1, dim)(x))."""

    def __init__(self, dim, fn):
        self.fn = fn
        # nn.GroupNorm default init: weight=1, bias=0 (deterministic).
        self.gamma = jnp.ones((dim,), dtype=jnp.float32)
        self.beta = jnp.zeros((dim,), dtype=jnp.float32)

    def __call__(self, x):
        x = groupnorm1_pallas(x, self.gamma, self.beta)
        return self.fn(x)


# --------------------------------------------------------------------------
# Reference + self-test
# --------------------------------------------------------------------------

def _groupnorm1_ref(x, gamma, beta):
    N, C, H, W = x.shape
    xr = x.reshape(N, -1).astype(jnp.float32)
    mu = xr.mean(axis=1, keepdims=True)
    var = ((xr - mu) ** 2).mean(axis=1, keepdims=True)
    y = ((xr - mu) / jnp.sqrt(var + EPS)).reshape(N, C, H, W)
    y = y * gamma.reshape(1, C, 1, 1) + beta.reshape(1, C, 1, 1)
    return y.astype(x.dtype)


if __name__ == "__main__":
    key = jax.random.PRNGKey(0)

    # Test 1: module-level path (gamma=1, beta=0), single-pass kernel.
    N, C, H, W = 2, 4, 16, 16
    k1, k2, k3, k4 = jax.random.split(key, 4)
    x = jax.random.normal(k1, (N, C, H, W), dtype=jnp.float32)
    prenorm = PreNormPallas(C, fn=lambda y: y)   # fn: identity (arbitrary in PyTorch source)
    out = jax.block_until_ready(prenorm(x))
    ref = _groupnorm1_ref(x, prenorm.gamma, prenorm.beta)
    assert out.shape == (N, C, H, W)
    assert jnp.max(jnp.abs(out - ref)) < 2e-4

    # Test 2: non-trivial affine, forced two-pass tiled path (multi-tile reduction).
    N2, C2, H2, W2 = 2, 8, 16, 32
    x2 = jax.random.normal(k2, (N2, C2, H2, W2), dtype=jnp.float32)
    gamma2 = jax.random.normal(k3, (C2,), dtype=jnp.float32)
    beta2 = jax.random.normal(k4, (C2,), dtype=jnp.float32)
    out2 = jax.block_until_ready(
        groupnorm1_pallas(x2, gamma2, beta2, force_tiled=True, max_tile_bytes=32 << 10))
    ref2 = _groupnorm1_ref(x2, gamma2, beta2)
    assert jnp.max(jnp.abs(out2 - ref2)) < 2e-4

    # Test 2b: same inputs through the single-pass path (affine folding check).
    out2b = jax.block_until_ready(groupnorm1_pallas(x2, gamma2, beta2))
    assert jnp.max(jnp.abs(out2b - ref2)) < 2e-4

    print("KERNEL_OK")
</pallas_src>

<mosaic_0001>
module attributes {stable_mosaic.version = 11 : i64} {
  func.func @_gn1_fused_kernel(%arg0: i32, %arg1: memref<1x8x128xf32, #tpu.memory_space<vmem>>, %arg2: memref<1x8x1xf32, #tpu.memory_space<vmem>>, %arg3: memref<1x8x1xf32, #tpu.memory_space<vmem>>, %arg4: memref<1x8x128xf32, #tpu.memory_space<vmem>>) attributes {dimension_semantics = [#tpu.dimension_semantics<parallel>], iteration_bounds = array<i64: 2>, scalar_prefetch = 0 : i64, scratch_operands = 0 : i64, tpu.core_type = #tpu.core_type<tc>, window_params = [{transform_indices = @transform_0, window_bounds = array<i64: 1, 8, 128>}, {pipeline_mode = #tpu.pipeline_mode<synchronous>, transform_indices = @transform_1, window_bounds = array<i64: 1, 8, 1>}, {pipeline_mode = #tpu.pipeline_mode<synchronous>, transform_indices = @transform_2, window_bounds = array<i64: 1, 8, 1>}, {transform_indices = @transform_3, window_bounds = array<i64: 1, 8, 128>}]} {
    %c0 = arith.constant 0 : index
    %c0_0 = arith.constant 0 : index
    %c0_1 = arith.constant 0 : index
    %0 = vector.load %arg1[%c0, %c0_0, %c0_1] : memref<1x8x128xf32, #tpu.memory_space<vmem>>, vector<1x8x128xf32>
    %1 = vector.shape_cast %0 : vector<1x8x128xf32> to vector<1x1x8x128xf32>
    %cst = arith.constant dense<0.000000e+00> : vector<1xf32>
    %2 = vector.multi_reduction <add>, %1, %cst [1, 2, 3] : vector<1x1x8x128xf32> to vector<1xf32>
    %3 = vector.shape_cast %2 : vector<1xf32> to vector<1x1x1x1xf32>
    %4 = vector.extract %3[0, 0, 0, 0] : f32 from vector<1x1x1x1xf32>
    %5 = arith.mulf %0, %0 : vector<1x8x128xf32>
    %6 = vector.shape_cast %5 : vector<1x8x128xf32> to vector<1x1x8x128xf32>
    %cst_2 = arith.constant dense<0.000000e+00> : vector<1xf32>
    %7 = vector.multi_reduction <add>, %6, %cst_2 [1, 2, 3] : vector<1x1x8x128xf32> to vector<1xf32>
    %8 = vector.shape_cast %7 : vector<1xf32> to vector<1x1x1x1xf32>
    %9 = vector.extract %8[0, 0, 0, 0] : f32 from vector<1x1x1x1xf32>
    %cst_3 = arith.constant 1.024000e+03 : f32
    %10 = arith.divf %4, %cst_3 : f32
    %cst_4 = arith.constant 1.024000e+03 : f32
    %11 = arith.divf %9, %cst_4 : f32
    %12 = arith.mulf %10, %10 : f32
    %13 = arith.subf %11, %12 : f32
    %cst_5 = arith.constant 0.000000e+00 : f32
    %14 = arith.maximumf %13, %cst_5 : f32
    %cst_6 = arith.constant 9.99999974E-6 : f32
    %15 = arith.addf %14, %cst_6 : f32
    %16 = math.rsqrt %15 : f32
    %c0_7 = arith.constant 0 : index
    %c0_8 = arith.constant 0 : index
    %c0_9 = arith.constant 0 : index
    %17 = vector.load %arg2[%c0_7, %c0_8, %c0_9] : memref<1x8x1xf32, #tpu.memory_space<vmem>>, vector<1x8x1xf32>
    %18 = vector.broadcast %16 : f32 to vector<1x8x1xf32>
    %19 = arith.mulf %17, %18 : vector<1x8x1xf32>
    %c0_10 = arith.constant 0 : index
    %c0_11 = arith.constant 0 : index
    %c0_12 = arith.constant 0 : index
    %20 = vector.load %arg3[%c0_10, %c0_11, %c0_12] : memref<1x8x1xf32, #tpu.memory_space<vmem>>, vector<1x8x1xf32>
    %21 = vector.broadcast %10 : f32 to vector<1x8x1xf32>
    %22 = arith.mulf %21, %19 : vector<1x8x1xf32>
    %23 = arith.subf %20, %22 : vector<1x8x1xf32>
    %24 = vector.broadcast %19 : vector<1x8x1xf32> to vector<1x8x128xf32>
    %25 = arith.mulf %0, %24 : vector<1x8x128xf32>
    %26 = vector.broadcast %23 : vector<1x8x1xf32> to vector<1x8x128xf32>
    %27 = arith.addf %25, %26 : vector<1x8x128xf32>
    %c0_13 = arith.constant 0 : index
    %c0_14 = arith.constant 0 : index
    %c0_15 = arith.constant 0 : index
    %28 = vector.load %arg4[%c0_13, %c0_14, %c0_15] : memref<1x8x128xf32, #tpu.memory_space<vmem>>, vector<1x8x128xf32>
    tpu.vector_store %arg4[%c0_13, %c0_14, %c0_15], %27 {strides = array<i32>} : memref<1x8x128xf32, #tpu.memory_space<vmem>>, vector<1x8x128xf32>,
    return
  }
  func.func @transform_0(%arg0: i32) -> (i32, i32, i32) {
    %c0_i32 = arith.constant 0 : i32
    %c0_i32_0 = arith.constant 0 : i32
    %c0_i32_1 = arith.constant 0 : i32
    return %arg0, %c0_i32, %c0_i32_0 : i32, i32, i32
  }
  func.func @transform_1(%arg0: i32) -> (i32, i32, i32) {
    %c0_i32 = arith.constant 0 : i32
    %c0_i32_0 = arith.constant 0 : i32
    %c0_i32_1 = arith.constant 0 : i32
    %c0_i32_2 = arith.constant 0 : i32
    return %c0_i32, %c0_i32_0, %c0_i32_1 : i32, i32, i32
  }
  func.func @transform_2(%arg0: i32) -> (i32, i32, i32) {
    %c0_i32 = arith.constant 0 : i32
    %c0_i32_0 = arith.constant 0 : i32
    %c0_i32_1 = arith.constant 0 : i32
    %c0_i32_2 = arith.constant 0 : i32
    return %c0_i32, %c0_i32_0, %c0_i32_1 : i32, i32, i32
  }
  func.func @transform_3(%arg0: i32) -> (i32, i32, i32) {
    %c0_i32 = arith.constant 0 : i32
    %c0_i32_0 = arith.constant 0 : i32
    %c0_i32_1 = arith.constant 0 : i32
    return %arg0, %c0_i32, %c0_i32_0 : i32, i32, i32
  }
}

</mosaic_0001>

<bundles_post_ra>
// kernel: tpu_custom_call.1
= control target key start
LH: loop header
LB: loop body
LE: loop exit
PB: predicated region body
PF: predicated region fallthrough
CT: control target
= control target key end

     0   :  { %8 = vsyncpa [#allocation3], 0  ;;  %s546_s0 = inlined_call_operand.vmem [shape: f32[2,8,128], index: 0, kind: input, shape index: {}]   ;;  %s547_s1 = inlined_call_operand.vmem [shape: f32[1,8,1], index: 1, kind: input, shape index: {}]   ;;  %s548_s2 = inlined_call_operand.vmem [shape: f32[1,8,1], index: 2, kind: input, shape index: {}]   ;;  %s549_s3 = inlined_call_operand.hbm [shape: f32[2,8,128], index: 3, kind: output, shape index: {}]  }
   0x1   :  { %10 = vsyncpa [#allocation3 + $0x1], 0  ;;  %s440_s12 = smov 0   ;;  %s442_s13 = smov 0  }
   0x2   :  { %s444_s14 = smov 0   ;;  %s446_s15 = smov 0  }
   0x3 LB: > { %s461_s16 = sadd.s32 4294967295, %s415_s15   ;;  %s292_s17 = sadd.s32 4294967294, %s415_s15   ;;  %s415_s15 = sphi %s446_s15, %s555_s15   ;;  %s411_s14 = sphi %s444_s14, %s554_s14   ;;  %s407_s13 = sphi %s442_s13, %s553_s13   ;;  %s403_s12 = sphi %s440_s12, %s552_s12  }
   0x4   : > { %s465_s18 = sadd.s32 1, %s415_s15   ;;  %s91_s19 = sadd.s32 1, %s411_s14 }
   0x5   : > { %s88_s20 = ssub.s32 %s415_s15, %s465_s18  ;;  %p101_p0 = scmp.ne.s32.totalorder %s411_s14, %s407_s13 }
   0x6   : > { %p89_p1 = scmp.eq.s32.totalorder %s88_s20, 0  ;;  %p102_p2 = scmp.eq.s32.totalorder %s461_s16, 1 }
   0x7   : > { %p107_p3 = scmp.ne.s32.totalorder %s407_s13, %s403_s12  ;;  %p108_p4 = scmp.eq.s32.totalorder %s292_s17, 1 }
   0x8   : > { %s476_s21 = scalar_select %p89_p1, %s411_s14, %s91_s19  }
   0x9   : > { %p478_p5 = por %p102_p2, %p101_p0  ;;  %p482_p6 = por %p108_p4, %p107_p3 }
   0xa   : > { %p295_p7 = scmp.ge.s32.totalorder %s415_s15, 1  ;;  %p139_p8 = scmp.lt.s32.totalorder %s415_s15, 3 }
   0xc   : > { %p140_p9 = pnand %p295_p7, %p139_p8 }
   0xd   : > { %p162_p10 = scmp.lt.s32.totalorder (!%p140_p9), %s461_s16, 1  ;;  %v417_v12 = vmov (!%p140_p9), 0   ;;  %s418_s8 = smov (!%p140_p9), 0.0   ;;  %v199_v19 = vld [vmem:[%s547_s1] sm:$0xff] (!%p140_p9) }
   0xe   : > { %143 = sbr.rel (%p140_p9) target bundleno = 454 (0x1c6), region = 32  ;;  %349 = vset.pattern.permute.xlu1 (!%p140_p9), %v417_v12  ;;  %350 = vset.pattern.permute.xlu0 (!%p140_p9), %v417_v12  ;;  %v202_v23 = vld [vmem:[%s548_s2] sm:$0xff] (!%p140_p9)  ;;  %s299_s27 = sshll.u32 (!%p140_p9), %s461_s16, 7 }
  0x15   : > { %s163_s24 = scalar_select %p162_p10, %s461_s16, 1 }
  0x16   : > { %s419_s16 = smov [#allocation2]  }
  0x17   : > { %s297_s25 = sshll.u32 %s163_s24, 3 }
  0x18   : > { %s165_s28 = scalar_lea.vmem %s546_s0, %s297_s25  ;;  %s159_s25 = sand.u32 1, %s407_s13  }
  0x19   : > { %v166_v0 = vld [vmem:[%s165_s28] sm:$0xff]  ;;  %s296_s26 = sshll.u32 %s159_s25, 3 }
  0x1a   : > { %167 = vadd.xlane.f32.xlu0 %v166_v0  ;;  %v176_v1 = vmul.f32 %v166_v0, %v166_v0  ;;  %s161_s28 = scalar_lea.vmem [#allocation2], %s296_s26 }
  0x1e   : > { %177 = vadd.xlane.f32.xlu0 %v176_v1 }
  0xa7   : > { %v168_v2 = vpop.xlane.xlu0 %167 }
  0xa8   : > { %v169_v3 = vrot.slane %v168_v2, 4 }
  0xaa   : > { %v170_v4 = vadd.f32 %v169_v3, %v168_v2 }
  0xab   : > { %v178_v5 = vpop.xlane.xlu0 %177 }
  0xac   : > { %v171_v6 = vrot.slane %v170_v4, 2  ;;  %v179_v7 = vrot.slane %v178_v5, 4 }
  0xae   : > { %v180_v8 = vadd.f32 %v179_v7, %v178_v5  ;;  %v172_v9 = vadd.f32 %v171_v6, %v170_v4 }
  0xb0   : > { %v181_v10 = vrot.slane %v180_v8, 2  ;;  %v173_v11 = vrot.slane %v172_v9, 1 }
  0xb2   : > { %v182_v13 = vadd.f32 %v181_v10, %v180_v8  ;;  %v174_v14 = vadd.f32 %v173_v11, %v172_v9 }
  0xb4   : > { %302 = vpush %v174_v14  ;;  %v183_v15 = vrot.slane %v182_v13, 1 }
  0xb6   : > { %v184_v16 = vadd.f32 %v183_v15, %v182_v13 }
  0xb8   : > { %304 = vpush %v184_v16 }
  0xe5   : > { %s303_s29 = spop %302 }
  0xe6   : > { %s188_s30 = smul.f32 0.0009765625, %s303_s29  ;;  %s233_s29 = sshll.u32 %s161_s28, 4  ;;  %s506_s29 = int_to_ptr.vmem [resolvable:$true] %s233_s29 }
  0xe8   : > { %s192_s4 = smul.f32 %s188_s30, %s188_s30  ;;  %v203_v22 = vstv %s188_s30 }
  0xe9   : > { %s305_s5 = spop %304 }
  0xea   : > { %s191_s6 = smul.f32 0.0009765625, %s305_s5  ;;  %s504_s5 = scalar_lea.hbm %s549_s3, %s299_s27 }
  0xec   : > { %s193_s7 = ssub.f32 %s191_s6, %s192_s4  ;;  %s220_s6 = scalar_lea.sflag [#allocation3], %s159_s25 }
  0xee   : > { %s194_s9 = smax.f32 %s418_s8, %s193_s7  ;;  %s353_s7 = scalar_lea.vmem %s506_s29, 128 }
  0xef   : > { %s195_s10 = sadd.f32 1e-05, %s194_s9  ;;  %p354_p11 = scmp.ne.s32.totalorder %s506_s29, %s353_s7 }
  0xf0   : > { %s357_s8 = sshll.u32 %s419_s16, 4  ;;  %s358_s8 = int_to_ptr.vmem [resolvable:$false] %s357_s8 }
  0xf1   : > { %v196_v17 = vstv %s195_s10  ;;  %p355_p12 = pnand %p354_p11, %p478_p5  ;;  %s359_s9 = scalar_lea.vmem %s358_s8, 256 }
  0xf2   : > { %351 = vrsqrt.f32 %v196_v17  ;;  %p360_p0 = scmp.lt.s32.totalorder %s506_s29, %s358_s8  ;;  %p361_p1 = scmp.lt.s32.totalorder %s359_s9, %s353_s7 }
  0xf3   : > { %p356_p13 = pneg %p355_p12 }
  0xf4   : > { %p362_p2 = por %p361_p1, %p360_p0 }
  0xf6   : > { %p363_p3 = pnand %p362_p2, %p356_p13 }
  0xfc   : > { %v352_v18 = vpop.eup %351 }
  0xfd   : > { %306 = vpush %v352_v18 }
 0x12e   : > { %s307_s19 = spop %306 }
 0x12f   : > { %v200_v20 = vstv %s307_s19 }
 0x130   : > { %v201_v21 = vmul.f32 %v200_v20, %v199_v19 }
 0x132   : > { %v204_v24 = vmul.f32 %v203_v22, %v201_v21  ;;  %208 = vperm.xlu1 %349, %v201_v21  }
 0x134   : > { %v205_v25 = vsub.f32 %v202_v23, %v204_v24 }
 0x136   : > { %214 = vperm.xlu1 %349, %v205_v25  }
 0x1b1   : > { %v209_v26 = vpop.permute.xlu1 %208 }
 0x1b2   : > { %v211_v27 = vmul.f32 %v209_v26, %v166_v0 }
 0x1b5   : > { %v215_v28 = vpop.permute.xlu1 %214 }
 0x1b6   : > { %v217_v29 = vadd.f32 %v215_v28, %v211_v27 }
 0x1b8   : > { %218 = vst [vmem:[%s161_s28] sm:$0xff] %v217_v29 }
 0x1b9   : > { %366 = shalt.err (!%p363_p3)
}
 0x1ba   : > { %s367_s10 = scalar_lea.hbm %s504_s5, 128  ;;  %s371_s19 = scalar_lea.hbm %s549_s3, 256 }
 0x1bb   : > { %p368_p4 = scmp.ne.s32.totalorder %s504_s5, %s367_s10  ;;  %p372_p9 = scmp.lt.u32.totalorder %s504_s5, %s549_s3 }
 0x1bc   : > { %p373_p10 = scmp.lt.u32.totalorder %s371_s19, %s367_s10  ;;  %p375_p12 = scmp.lt.u32.totalorder %s367_s10, %s504_s5 }
 0x1bd   : > { %p369_p7 = pnand %p368_p4, %p478_p5 }
 0x1be   : > { %p374_p11 = por %p373_p10, %p372_p9 }
 0x1bf   : > { %p370_p8 = pneg %p369_p7 }
 0x1c0   : > { %p376_p13 = por %p375_p12, %p374_p11 }
 0x1c2   : > { %p377_p0 = pnand %p376_p13, %p370_p8 }
 0x1c4   : > { %380 = shalt.err (!%p377_p0)
}
 0x1c5   : > { %308 = dma.vmem_to_hbm [thread:$0]  (%p478_p5), %s506_s29, 128, %s504_s5, %s220_s6  }
 0x1c6 PF: > { %p314_p1 = scmp.ge.s32.totalorder %s415_s15, 2  ;;  %s245_s25 = sand.u32 1, %s403_s12  }
 0x1c7   : > { %s246_s26 = scalar_lea.sflag [#allocation3], %s245_s25 }
 0x1c8   : > { %p311_p2 = pnand %p314_p1, %p482_p6 }
 0x1ca   : > { %398 = dma.done.wait (!%p311_p2), %s246_s26, 128  }
 0x1cb   : > { %400 = vsyncadd (!%p311_p2), %s246_s26, 4294967168  ;;  %p13_p3 = scmp.ge.s32.totalorder %s465_s18, 4   ;;  %s552_s12 = smov %s407_s13 }
 0x1cc   : > { %s553_s13 = smov %s411_s14  ;;  %s554_s14 = smov %s476_s21 }
 0x1cd   : > { %s555_s15 = smov %s465_s18  ;;  %15 = sbr.rel (!%p13_p3) target bundleno = 3 (0x3), region = 67 }
 0x1d4   :  { %251 = vsyncpa [#allocation3], 1 }
 0x1d5   :  { %253 = vsyncpa [#allocation3 + $0x1], 1 }

</bundles_post_ra>
